<compile_context>
chip_gen: v7x
topology: tpu7x:2x2x1
jax: 0.10.0
libtpu: 0.0.40
codegen_flags: <defaults>
</compile_context>

<pallas_src>
import functools

import jax
import jax.numpy as jnp
from jax import lax
from jax.experimental import pallas as pl
from jax.experimental.pallas import tpu as pltpu


def _round_up(x, m):
    return (x + m - 1) // m * m


# ----------------------------------------------------------------------------
# Fused kernel: one matmul per sample (conv as im2col GEMM, bias folded in),
# then GroupNorm + ReLU, for a block of nb samples.
#   p_ref   : (nb, Kpad, H*W)  patch matrix, compute dtype (bf16), lane-dense
#   wt_ref  : (Cout, Kpad)     conv weight (+bias column), compute dtype
#   gavg_ref: (Cout, Cout)     same-group indicator / (Cg*H*W), f32
#   g_ref   : (Cout, 1)        GroupNorm gamma, f32
#   bt_ref  : (Cout, 1)        GroupNorm beta, f32
#   out_ref : (nb, Cout, H*W)  lane-dense output (reshaped to NCHW outside)
# ----------------------------------------------------------------------------
def _convmm_gn_relu_kernel(p_ref, wt_ref, gavg_ref, g_ref, bt_ref, out_ref, *, eps):
    wt = wt_ref[...]          # grid-invariant operands loaded once per step
    gavg = gavg_ref[...]
    gamma = g_ref[...]
    beta = bt_ref[...]
    nb = p_ref.shape[0]

    for n in range(nb):       # static unroll over samples in this block
        # Conv (+ bias, folded): (Cout, Kpad) x (Kpad, H*W) -> (Cout, H*W), f32 acc.
        y = jnp.dot(wt, p_ref[n], preferred_element_type=jnp.float32)

        # GroupNorm: lane-reduce FIRST, then group-average via tiny (Cout,1) matmuls.
        s1 = jnp.sum(y, axis=1, keepdims=True)                           # (Cout, 1)
        mean = jnp.dot(gavg, s1, preferred_element_type=jnp.float32)     # group mean
        d = y - mean
        s2 = jnp.sum(d * d, axis=1, keepdims=True)                       # (Cout, 1)
        var = jnp.dot(gavg, s2, preferred_element_type=jnp.float32)      # group var
        inv = lax.rsqrt(var + eps)

        out_ref[n] = jnp.maximum(d * (inv * gamma) + beta, 0.0).astype(out_ref.dtype)


# ----------------------------------------------------------------------------
# Wrapper: NCHW in, NCHW out.  All layout work (padding, im2col, weight
# re-layout, dtype casts) is done here in XLA; the kernel only does GEMM + GN.
# ----------------------------------------------------------------------------
@functools.partial(
    jax.jit,
    static_argnames=("groups", "eps", "compute_dtype", "samples_per_block"))
def based_module_5_1_forward(x_nchw, params, *, groups=4, eps=1e-5,
                             compute_dtype=jnp.bfloat16, samples_per_block=None):
    N, Cin, H, W = x_nchw.shape
    w = params["w"]                                  # (3, 3, Cin, Cout)  HWIO
    Cout = w.shape[-1]
    Cg = Cout // groups
    HW = H * W
    K = 9 * Cin
    Kpad = _round_up(K + 1, 8)                       # +1 bias row, 8-sublane granule

    # Samples per grid step: amortize per-step overhead while keeping >= 2 grid
    # steps (megacore balance on v7x) whenever N >= 2.
    if samples_per_block is None:
        nb = max(1, min(8, N // 2)) if N >= 2 else 1
    else:
        nb = int(samples_per_block)
    Npad = _round_up(N, nb)

    # Conv weight -> (Cout, Kpad): columns ordered (ky, kx, ci), bias in column K,
    # zero padding after; pre-cast to the MXU compute dtype.
    wt = jnp.transpose(w, (3, 0, 1, 2)).reshape(Cout, K)
    wt = jnp.concatenate(
        [wt,
         params["b"].reshape(Cout, 1),
         jnp.zeros((Cout, Kpad - K - 1), wt.dtype)], axis=1).astype(compute_dtype)

    gamma = params["gamma"].reshape(Cout, 1).astype(jnp.float32)
    beta = params["beta"].reshape(Cout, 1).astype(jnp.float32)

    # Same-group averaging matrix (folds 1/(Cg*H*W)); kept in f32.
    gid = jnp.arange(Cout) // Cg
    gavg = (gid[:, None] == gid[None, :]).astype(jnp.float32) / float(Cg * HW)

    # Lane-dense im2col patch matrix, built OUTSIDE the kernel:
    # rows ordered (ky, kx, ci), then a ones row (bias), then zero rows to Kpad.
    xb = x_nchw
    if Npad != N:
        xb = jnp.pad(xb, ((0, Npad - N), (0, 0), (0, 0), (0, 0)))
    xp = jnp.pad(xb, ((0, 0), (0, 0), (1, 1), (1, 1)))          # 3x3 "same" padding
    taps = [xp[:, :, dy:dy + H, dx:dx + W] for dy in range(3) for dx in range(3)]
    patches = jnp.stack(taps, axis=1).reshape(Npad, K, HW).astype(compute_dtype)
    patches = jnp.concatenate(
        [patches,
         jnp.ones((Npad, 1, HW), compute_dtype),
         jnp.zeros((Npad, Kpad - K - 1, HW), compute_dtype)], axis=1)

    grid = (Npad // nb,)
    block_bytes = (nb * Kpad * HW * jnp.dtype(compute_dtype).itemsize
                   + nb * Cout * HW * x_nchw.dtype.itemsize)
    # Keep within v7x scoped-VMEM guidance (<= ~48 MiB); tiny at these sizes anyway.
    vmem_limit = int(min(48 * 1024 * 1024,
                         max(16 * 1024 * 1024, 6 * block_bytes)))

    out_flat = pl.pallas_call(
        functools.partial(_convmm_gn_relu_kernel, eps=eps),
        out_shape=jax.ShapeDtypeStruct((Npad, Cout, HW), x_nchw.dtype),
        grid=grid,
        in_specs=[
            pl.BlockSpec((nb, Kpad, HW), lambda i: (i, 0, 0)),   # patches (lane-dense)
            pl.BlockSpec((Cout, Kpad), lambda i: (0, 0)),        # weights (+bias col)
            pl.BlockSpec((Cout, Cout), lambda i: (0, 0)),        # group-avg matrix
            pl.BlockSpec((Cout, 1), lambda i: (0, 0)),           # gamma
            pl.BlockSpec((Cout, 1), lambda i: (0, 0)),           # beta
        ],
        out_specs=pl.BlockSpec((nb, Cout, HW), lambda i: (i, 0, 0)),
        compiler_params=pltpu.CompilerParams(
            dimension_semantics=("parallel",),
            vmem_limit_bytes=vmem_limit,
        ),
    )(patches, wt, gavg, gamma, beta)

    # (Npad, Cout, H*W) -> (N, Cout, H, W): minor-dim reshape, stays NCHW.
    return out_flat[:N].reshape(N, Cout, H, W)


# ----------------------------------------------------------------------------
# Deterministic parameter construction (mirrors nn.Conv2d + nn.GroupNorm shapes)
# ----------------------------------------------------------------------------
def make_params(key, cin, cout):
    k1, k2, k3, k4 = jax.random.split(key, 4)
    w = jax.random.normal(k1, (3, 3, cin, cout), jnp.float32) * 0.1     # HWIO
    b = jax.random.normal(k2, (cout,), jnp.float32) * 0.1
    gamma = 1.0 + 0.1 * jax.random.normal(k3, (cout,), jnp.float32)
    beta = 0.1 * jax.random.normal(k4, (cout,), jnp.float32)
    return {"w": w, "b": b, "gamma": gamma, "beta": beta}


# ----------------------------------------------------------------------------
# Pure-JAX reference (un-fused) for verification
# ----------------------------------------------------------------------------
def reference(x_nchw, params, groups=4, eps=1e-5):
    w_oihw = jnp.transpose(params["w"], (3, 2, 0, 1))
    y = lax.conv_general_dilated(x_nchw, w_oihw, (1, 1), ((1, 1), (1, 1)),
                                 dimension_numbers=("NCHW", "OIHW", "NCHW"))
    y = y + params["b"][None, :, None, None]
    N, C, H, W = y.shape
    yg = y.reshape(N, groups, C // groups, H, W)
    mean = yg.mean(axis=(2, 3, 4), keepdims=True)
    var = jnp.mean((yg - mean) ** 2, axis=(2, 3, 4), keepdims=True)
    yn = ((yg - mean) / jnp.sqrt(var + eps)).reshape(N, C, H, W)
    out = yn * params["gamma"][None, :, None, None] + params["beta"][None, :, None, None]
    return jnp.maximum(out, 0.0)


if __name__ == "__main__":
    key = jax.random.PRNGKey(0)
    kx, kp = jax.random.split(key)

    N, Cin, H, W = 2, 4, 16, 16
    Cout = 16                               # must be divisible by 4 (GroupNorm groups)
    x = jax.random.normal(kx, (N, Cin, H, W), jnp.float32)   # PyTorch NCHW input
    params = make_params(kp, Cin, Cout)

    ref = reference(x, params)

    # Exact-math check: f32 MXU path against the f32 reference.
    out_f32 = jax.block_until_ready(
        based_module_5_1_forward(x, params, compute_dtype=jnp.float32))
    assert out_f32.shape == (N, Cout, H, W), out_f32.shape
    assert jnp.allclose(out_f32, ref, rtol=1e-4, atol=1e-4), \
        float(jnp.max(jnp.abs(out_f32 - ref)))

    # Default perf path: bf16 MXU inputs, f32 accumulation / GroupNorm math.
    out_bf16 = jax.block_until_ready(based_module_5_1_forward(x, params))
    assert out_bf16.shape == (N, Cout, H, W), out_bf16.shape
    assert jnp.allclose(out_bf16, ref, rtol=5e-2, atol=5e-2), \
        float(jnp.max(jnp.abs(out_bf16 - ref)))

    print("KERNEL_OK")
</pallas_src>

<mosaic_0001>
module attributes {stable_mosaic.version = 11 : i64} {
  func.func @_convmm_gn_relu_kernel(%arg0: i32, %arg1: memref<1x40x256xf32, #tpu.memory_space<vmem>>, %arg2: memref<16x40xf32, #tpu.memory_space<vmem>>, %arg3: memref<16x16xf32, #tpu.memory_space<vmem>>, %arg4: memref<16x1xf32, #tpu.memory_space<vmem>>, %arg5: memref<16x1xf32, #tpu.memory_space<vmem>>, %arg6: memref<1x16x256xf32, #tpu.memory_space<vmem>>) attributes {dimension_semantics = [#tpu.dimension_semantics<parallel>], iteration_bounds = array<i64: 2>, scalar_prefetch = 0 : i64, scratch_operands = 0 : i64, tpu.core_type = #tpu.core_type<tc>, window_params = [{transform_indices = @transform_0, window_bounds = array<i64: 1, 40, 256>}, {pipeline_mode = #tpu.pipeline_mode<synchronous>, transform_indices = @transform_1, window_bounds = array<i64: 16, 40>}, {pipeline_mode = #tpu.pipeline_mode<synchronous>, transform_indices = @transform_2, window_bounds = array<i64: 16, 16>}, {pipeline_mode = #tpu.pipeline_mode<synchronous>, transform_indices = @transform_3, window_bounds = array<i64: 16, 1>}, {pipeline_mode = #tpu.pipeline_mode<synchronous>, transform_indices = @transform_4, window_bounds = array<i64: 16, 1>}, {transform_indices = @transform_5, window_bounds = array<i64: 1, 16, 256>}]} {
    %c0 = arith.constant 0 : index
    %c0_0 = arith.constant 0 : index
    %0 = vector.load %arg2[%c0, %c0_0] : memref<16x40xf32, #tpu.memory_space<vmem>>, vector<16x40xf32>
    %c0_1 = arith.constant 0 : index
    %c0_2 = arith.constant 0 : index
    %1 = vector.load %arg3[%c0_1, %c0_2] : memref<16x16xf32, #tpu.memory_space<vmem>>, vector<16x16xf32>
    %c0_3 = arith.constant 0 : index
    %c0_4 = arith.constant 0 : index
    %2 = vector.load %arg4[%c0_3, %c0_4] : memref<16x1xf32, #tpu.memory_space<vmem>>, vector<16x1xf32>
    %c0_5 = arith.constant 0 : index
    %c0_6 = arith.constant 0 : index
    %3 = vector.load %arg5[%c0_5, %c0_6] : memref<16x1xf32, #tpu.memory_space<vmem>>, vector<16x1xf32>
    %c0_7 = arith.constant 0 : index
    %c0_8 = arith.constant 0 : index
    %c0_9 = arith.constant 0 : index
    %4 = vector.load %arg1[%c0_7, %c0_8, %c0_9] : memref<1x40x256xf32, #tpu.memory_space<vmem>>, vector<1x40x256xf32>
    %5 = vector.shape_cast %4 : vector<1x40x256xf32> to vector<40x256xf32>
    %cst = arith.constant dense<0.000000e+00> : vector<16x256xf32>
    %6 = tpu.matmul %0, %5, %cst {dimension_numbers = #tpu.dot_dimension_numbers<[1], [0], [0], [1], [0, 0, 1, 1], [], []>} : vector<16x40xf32>, vector<40x256xf32>, vector<16x256xf32> -> vector<16x256xf32>
    %cst_10 = arith.constant dense<0.000000e+00> : vector<16xf32>
    %7 = vector.multi_reduction <add>, %6, %cst_10 [1] : vector<16x256xf32> to vector<16xf32>
    %8 = vector.shape_cast %7 : vector<16xf32> to vector<16x1xf32>
    %cst_11 = arith.constant dense<0.000000e+00> : vector<16x1xf32>
    %9 = tpu.matmul %1, %8, %cst_11 {dimension_numbers = #tpu.dot_dimension_numbers<[1], [0], [0], [1], [0, 0, 1, 1], [], []>} : vector<16x16xf32>, vector<16x1xf32>, vector<16x1xf32> -> vector<16x1xf32>
    %10 = vector.broadcast %9 : vector<16x1xf32> to vector<16x256xf32>
    %11 = arith.subf %6, %10 : vector<16x256xf32>
    %12 = arith.mulf %11, %11 : vector<16x256xf32>
    %cst_12 = arith.constant dense<0.000000e+00> : vector<16xf32>
    %13 = vector.multi_reduction <add>, %12, %cst_12 [1] : vector<16x256xf32> to vector<16xf32>
    %14 = vector.shape_cast %13 : vector<16xf32> to vector<16x1xf32>
    %cst_13 = arith.constant dense<0.000000e+00> : vector<16x1xf32>
    %15 = tpu.matmul %1, %14, %cst_13 {dimension_numbers = #tpu.dot_dimension_numbers<[1], [0], [0], [1], [0, 0, 1, 1], [], []>} : vector<16x16xf32>, vector<16x1xf32>, vector<16x1xf32> -> vector<16x1xf32>
    %cst_14 = arith.constant 9.99999974E-6 : f32
    %16 = vector.broadcast %cst_14 : f32 to vector<16x1xf32>
    %17 = arith.addf %15, %16 : vector<16x1xf32>
    %18 = math.rsqrt %17 : vector<16x1xf32>
    %19 = arith.mulf %18, %2 : vector<16x1xf32>
    %20 = vector.broadcast %19 : vector<16x1xf32> to vector<16x256xf32>
    %21 = arith.mulf %11, %20 : vector<16x256xf32>
    %22 = vector.broadcast %3 : vector<16x1xf32> to vector<16x256xf32>
    %23 = arith.addf %21, %22 : vector<16x256xf32>
    %cst_15 = arith.constant 0.000000e+00 : f32
    %24 = vector.broadcast %cst_15 : f32 to vector<16x256xf32>
    %25 = arith.maximumf %23, %24 : vector<16x256xf32>
    %c0_16 = arith.constant 0 : index
    %c0_17 = arith.constant 0 : index
    %c0_18 = arith.constant 0 : index
    %26 = vector.load %arg6[%c0_16, %c0_17, %c0_18] : memref<1x16x256xf32, #tpu.memory_space<vmem>>, vector<1x16x256xf32>
    %27 = vector.shape_cast %26 : vector<1x16x256xf32> to vector<16x256xf32>
    %28 = vector.shape_cast %25 : vector<16x256xf32> to vector<1x16x256xf32>
    tpu.vector_store %arg6[%c0_16, %c0_17, %c0_18], %28 {strides = array<i32>} : memref<1x16x256xf32, #tpu.memory_space<vmem>>, vector<1x16x256xf32>,
    return
  }
  func.func @transform_0(%arg0: i32) -> (i32, i32, i32) {
    %c0_i32 = arith.constant 0 : i32
    %c0_i32_0 = arith.constant 0 : i32
    %c0_i32_1 = arith.constant 0 : i32
    return %arg0, %c0_i32, %c0_i32_0 : i32, i32, i32
  }
  func.func @transform_1(%arg0: i32) -> (i32, i32) {
    %c0_i32 = arith.constant 0 : i32
    %c0_i32_0 = arith.constant 0 : i32
    %c0_i32_1 = arith.constant 0 : i32
    return %c0_i32, %c0_i32_0 : i32, i32
  }
  func.func @transform_2(%arg0: i32) -> (i32, i32) {
    %c0_i32 = arith.constant 0 : i32
    %c0_i32_0 = arith.constant 0 : i32
    %c0_i32_1 = arith.constant 0 : i32
    return %c0_i32, %c0_i32_0 : i32, i32
  }
  func.func @transform_3(%arg0: i32) -> (i32, i32) {
    %c0_i32 = arith.constant 0 : i32
    %c0_i32_0 = arith.constant 0 : i32
    %c0_i32_1 = arith.constant 0 : i32
    return %c0_i32, %c0_i32_0 : i32, i32
  }
  func.func @transform_4(%arg0: i32) -> (i32, i32) {
    %c0_i32 = arith.constant 0 : i32
    %c0_i32_0 = arith.constant 0 : i32
    %c0_i32_1 = arith.constant 0 : i32
    return %c0_i32, %c0_i32_0 : i32, i32
  }
  func.func @transform_5(%arg0: i32) -> (i32, i32, i32) {
    %c0_i32 = arith.constant 0 : i32
    %c0_i32_0 = arith.constant 0 : i32
    %c0_i32_1 = arith.constant 0 : i32
    return %arg0, %c0_i32, %c0_i32_0 : i32, i32, i32
  }
}

</mosaic_0001>

<bundles_post_ra>
// kernel: based_module_5_1_forward.1
= control target key start
LH: loop header
LB: loop body
LE: loop exit
PB: predicated region body
PF: predicated region fallthrough
CT: control target
= control target key end

     0   :  { %s721_s18 = smov 0   ;;  %s770_s0 = inlined_call_operand.vmem [shape: f32[2,40,256], index: 0, kind: input, shape index: {}]   ;;  %s771_s1 = inlined_call_operand.vmem [shape: f32[16,40], index: 1, kind: input, shape index: {}]   ;;  %s772_s2 = inlined_call_operand.vmem [shape: f32[16,16], index: 2, kind: input, shape index: {}]   ;;  %s773_s3 = inlined_call_operand.vmem [shape: f32[16,1], index: 3, kind: input, shape index: {}]   ;;  %s774_s4 = inlined_call_operand.vmem [shape: f32[16,1], index: 4, kind: input, shape index: {}]   ;;  %s775_s5 = inlined_call_operand.vmem [shape: f32[2,16,256], index: 5, kind: output, shape index: {}]  }
   0x1 LB: > { %s609_s19 = sadd.s32 4294967295, %s687_s18   ;;  %p613_p0 = scmp.ge.s32.totalorder %s687_s18, 1  ;;  %s687_s18 = sphi %s721_s18, %s15_s18  }
   0x2   : > { %p187_p1 = scmp.lt.s32.totalorder %s687_s18, 3 }
   0x4   : > { %p188_p2 = pnand %p613_p0, %p187_p1 }
   0x5   : > { %p215_p3 = scmp.lt.s32.totalorder (!%p188_p2), %s609_s19, 1  ;;  %v689_v0 = vmov (!%p188_p2), 0.0   ;;  %v225_v15 = vld [vmem:[%s771_s1] sm:$0xff] (!%p188_p2)  ;;  %vm243_vm0 = vcmask (!%p188_p2), 326656   ;;  %v226_v16 = vld [vmem:[%s771_s1 + $0x8] sm:$0xff] (!%p188_p2)  ;;  %vm333_vm1 = vcmask (!%p188_p2), 130048  }
   0x6   : > { %191 = sbr.rel (%p188_p2) target bundleno = 1261 (0x4ed), region = 40  ;;  %314 = vmatprep.mubr.f32.mxu0 (!%p188_p2), %v689_v0  ;;  %v227_v23 = vld [vmem:[%s772_s2] sm:$0xff] (!%p188_p2)  ;;  %v228_v27 = vld [vmem:[%s772_s2 + $0x8] sm:$0xff] (!%p188_p2)  ;;  %v690_v28 = vmov (!%p188_p2), 0  }
   0x7   : > { %638 = vmatprep.mubr.msk.f32.mxu1 (!%p188_p2), %vm333_vm1, %v227_v23  ;;  %675 = vset.pattern.permute.xlu1 (!%p188_p2), %v690_v28  ;;  %v231_v46 = vld [vmem:[%s774_s4] sm:$0xff] (!%p188_p2)  ;;  %v230_v51 = vld [vmem:[%s773_s3 + $0x8] sm:$0xff] (!%p188_p2) }
   0x8   : > { %676 = vset.pattern.permute.xlu0 (!%p188_p2), %v690_v28  ;;  %v229_v52 = vld [vmem:[%s773_s3] sm:$0xff] (!%p188_p2)  ;;  %v232_v57 = vld [vmem:[%s774_s4 + $0x8] sm:$0xff] (!%p188_p2) }
   0xd   : > { %s777_s19 = smov (!%p215_p3, %s609_s19), 1 }
   0xe   : > { %s664_s20 = smul.u32 80, %s777_s19  ;;  %s625_s15 = sshll.u32 %s777_s19, 5 }
  0x10   : > { %s219_s23 = scalar_lea.vmem %s770_s0, %s664_s20  ;;  %s224_s20 = scalar_lea.vmem %s775_s5, %s625_s15 }
  0x11   : > { %v234_v1 = vld [vmem:[%s219_s23 + $0x8] sm:$0xff]  ;;  %v236_v2 = vld [vmem:[%s219_s23 + $0x18] sm:$0xff]  ;;  %v233_v3 = vld [vmem:[%s219_s23] sm:$0xff] }
  0x12   : > { %v648_v4 = vpack.c.bf16 %v236_v2, %v234_v1  ;;  %v235_v5 = vld [vmem:[%s219_s23 + $0x10] sm:$0xff]  ;;  %v238_v6 = vld [vmem:[%s219_s23 + $0x28] sm:$0xff]  ;;  %v240_v7 = vld [vmem:[%s219_s23 + $0x38] sm:$0xff] }
  0x13   : > { %v650_v8 = vpack.c.bf16 %v235_v5, %v233_v3  ;;  %v652_v9 = vpack.c.bf16 %v240_v7, %v238_v6  ;;  %v237_v10 = vld [vmem:[%s219_s23 + $0x20] sm:$0xff]  ;;  %v239_v11 = vld [vmem:[%s219_s23 + $0x30] sm:$0xff]  ;;  %v242_v13 = vld [vmem:[%s219_s23 + $0x48] sm:$0xff] }
  0x14   : > { %649 = vmatprep.subr.bf16.mxu0 %v648_v4  ;;  %v654_v12 = vpack.c.bf16 %v239_v11, %v237_v10  ;;  %v241_v14 = vld [vmem:[%s219_s23 + $0x40] sm:$0xff] }
  0x15   : > { %651 = vmatpush1.bf16.msra.mxu0 %v650_v8 }
  0x16   : > { %653 = vmatprep.subr.bf16.mxu0 %v652_v9 }
  0x19   : > { %655 = vmatpush1.bf16.msra.mxu0 %v654_v12 }
  0x1a   : > { %258 = vmatprep.subr.mxu0 %v242_v13 }
  0x1d   : > { %259 = vmatpush1.msra.mxu0 %v241_v14 }
  0x1e   : > { %617 = vmatmul.mubr.msk.f32.vlgmr.msra.gmra.mrb[0].mxu0 %vm243_vm0, %v225_v15 }
  0x1f   : > { %320 = vmatprep.mubr.f32.mxu0 %v689_v0 }
  0x22   : > { %618 = vmatmul.mubr.msk.f32.gmra.mrb[2].mxu0 %vm243_vm0, %v226_v16 }
  0xf1   : > { %v316_v17 = vpop.f32.mrb[0].mxu0 }
  0xf2   : > { %v318_v18 = vpop.f32.mrb[1].mxu0 }
  0xf3   : > { %v327_v19 = vadd.f32 %v318_v18, %v316_v17 }
  0xf5   : > { %328 = vadd.xlane.f32.xlu0 %v327_v19  ;;  %v322_v20 = vpop.f32.mrb[2].mxu0 }
  0xf6   : > { %v324_v21 = vpop.f32.mrb[3].mxu0 }
  0xf7   : > { %v330_v22 = vadd.f32 %v324_v21, %v322_v20 }
  0xf9   : > { %331 = vadd.xlane.f32.xlu0 %v330_v22 }
 0x182   : > { %v329_v24 = vpop.xlane.xlu0 %328 }
 0x186   : > { %v332_v25 = vpop.xlane.xlu0 %331 }
 0x187   : > { %v656_v26 = vpack.c.bf16 %v332_v25, %v329_v24 }
 0x189   : > { %657 = vmatprep.subr.bf16.mxu1 %v656_v26 }
 0x18a   : > { %659 = vmatpush3.bf16.msra.mxu1 %v656_v26 }
 0x18d   : > { %639 = vmatmul.mubr.msk.f32.vlgmr.msra.gmra.mrb[0].mxu1 %vm333_vm1, %v228_v27 }
 0x18e   : > { %645 = vmatprep.mubr.msk.f32.mxu1 %vm333_vm1, %v227_v23 }
 0x260   : > { %v640_v29 = vpop.f32.mrb[0].mxu1 }
 0x261   : > { %v406_v30 = vpop.f32.mrb[1].mxu1 }
 0x262   : > { %417 = vperm.xlu1 %675, %v406_v30  }
 0x266   : > { %422 = vperm.xlu1 %675, %v640_v29  }
 0x2e1   : > { %v418_v31 = vpop.permute.xlu1 %417 }
 0x2e2   : > { %v425_v32 = vsub.f32 %v316_v17, %v418_v31  ;;  %v426_v33 = vsub.f32 %v318_v18, %v418_v31 }
 0x2e4   : > { %v429_v34 = vmul.f32 %v425_v32, %v425_v32  ;;  %v430_v35 = vmul.f32 %v426_v33, %v426_v33 }
 0x2e5   : > { %v423_v36 = vpop.permute.xlu1 %422 }
 0x2e6   : > { %v427_v37 = vsub.f32 %v322_v20, %v423_v36  ;;  %v428_v38 = vsub.f32 %v324_v21, %v423_v36  ;;  %v433_v39 = vadd.f32 %v430_v35, %v429_v34 }
 0x2e8   : > { %434 = vadd.xlane.f32.xlu0 %v433_v39  ;;  %v431_v40 = vmul.f32 %v427_v37, %v427_v37  ;;  %v432_v41 = vmul.f32 %v428_v38, %v428_v38 }
 0x2ea   : > { %v436_v42 = vadd.f32 %v432_v41, %v431_v40 }
 0x2ec   : > { %437 = vadd.xlane.f32.xlu1 %v436_v42 }
 0x2fe   : > { %534 = vperm.xlu0 %676, %v231_v46  }
 0x375   : > { %v435_v43 = vpop.xlane.xlu0 %434 }
 0x379   : > { %v438_v44 = vpop.xlane.xlu1 %437 }
 0x37a   : > { %v660_v45 = vpack.c.bf16 %v438_v44, %v435_v43 }
 0x37c   : > { %661 = vmatprep.subr.bf16.mxu1 %v660_v45 }
 0x37d   : > { %663 = vmatpush3.bf16.msra.mxu1 %v660_v45  ;;  %v535_v58 = vpop.permute.xlu0 %534 }
 0x380   : > { %646 = vmatmul.mubr.msk.f32.vlgmr.msra.gmra.mrb[2].mxu1 %vm333_vm1, %v228_v27 }
 0x453   : > { %v647_v47 = vpop.f32.mrb[2].mxu1 }
 0x454   : > { %v511_v48 = vadd.f32 1e-05, %v647_v47  ;;  %v505_v49 = vpop.f32.mrb[3].mxu1 }
 0x455   : > { %v506_v50 = vadd.f32 1e-05, %v505_v49 }
 0x456   : > { %677 = vrsqrt.f32 %v511_v48 }
 0x457   : > { %679 = vrsqrt.f32 %v506_v50 }
 0x460   : > { %v678_v53 = vpop.eup %677 }
 0x461   : > { %v680_v54 = vpop.eup %679  ;;  %v517_v55 = vmul.f32 %v678_v53, %v230_v51 }
 0x462   : > { %v516_v56 = vmul.f32 %v680_v54, %v229_v52 }
 0x463   : > { %525 = vperm.xlu1 %675, %v517_v55  }
 0x464   : > { %520 = vperm.xlu0 %676, %v516_v56  }
 0x468   : > { %539 = vperm.xlu0 %676, %v232_v57  }
 0x4e2   : > { %v526_v59 = vpop.permute.xlu1 %525 }
 0x4e3   : > { %v521_v60 = vpop.permute.xlu0 %520  ;;  %v530_v63 = vmul.f32 %v526_v59, %v427_v37  ;;  %v531_v0 = vmul.f32 %v526_v59, %v428_v38 }
 0x4e4   : > { %v528_v61 = vmul.f32 %v521_v60, %v425_v32  ;;  %v529_v62 = vmul.f32 %v521_v60, %v426_v33 }
 0x4e6   : > { %v542_v1 = vadd.f32 %v535_v58, %v528_v61  ;;  %v543_v2 = vadd.f32 %v535_v58, %v529_v62 }
 0x4e7   : > { %v540_v3 = vpop.permute.xlu0 %539 }
 0x4e8   : > { %v546_v4 = vmax.f32 %v542_v1, 0.0  ;;  %v547_v5 = vmax.f32 %v543_v2, 0.0  ;;  %v544_v6 = vadd.f32 %v540_v3, %v530_v63  ;;  %v545_v7 = vadd.f32 %v540_v3, %v531_v0 }
 0x4ea   : > { %550 = vst [vmem:[%s224_s20] sm:$0xff] %v546_v4  ;;  %551 = vst [vmem:[%s224_s20 + $0x8] sm:$0xff] %v547_v5  ;;  %v548_v8 = vmax.f32 %v544_v6, 0.0  ;;  %v549_v9 = vmax.f32 %v545_v7, 0.0 }
 0x4ec   : > { %552 = vst [vmem:[%s224_s20 + $0x10] sm:$0xff] %v548_v8  ;;  %553 = vst [vmem:[%s224_s20 + $0x18] sm:$0xff] %v549_v9 }
 0x4ed PF: > { %s15_s18 = sadd.s32 1, %s687_s18  }
 0x4ee   : > { %p12_p4 = scmp.ge.s32.totalorder %s15_s18, 4  }
 0x4f0   :  { %14 = sbr.rel (!%p12_p4) target bundleno = 1 (0x1), region = 70 }

</bundles_post_ra>
